<compile_context>
chip_gen: v6e
topology: v6e:2x2x1
jax: 0.10.0
libtpu: 0.0.40
codegen_flags: <defaults>
</compile_context>

<pallas_src>
import functools

import jax
import jax.numpy as jnp
from jax.experimental import pallas as pl
from jax.experimental.pallas import tpu as pltpu

_LANE = 128
_SUBLANE = 8


def _round_up(x, m):
    return (x + m - 1) // m * m


def _vmem_limit_bytes():
    """Generation-aware VMEM limit: ~85% of physical, capped at 110 MiB."""
    try:
        cap = pltpu.get_tpu_info().vmem_capacity_bytes
    except Exception:
        cap = 64 * 1024 * 1024          # conservative (v7x per-core) fallback
    return int(min(0.85 * cap, 110 * 1024 * 1024))


def _gemm_bn_swish_kernel(p_ref, w_ref, sb_ref, o_ref, *, approx_swish):
    """One (cout-tile, m-tile) grid step: GEMM + folded BatchNorm + Swish.

    p_ref : (tile_m, Kc_pad)   im2col patches, compute dtype
    w_ref : (Kc_pad, tile_c)   flattened conv weights, compute dtype
    sb_ref: (8, tile_c)        row 0 = BN scale, row 1 = BN bias (f32)
    o_ref : (tile_m, tile_c)   output tile (lane-dense: tile_c % 128 == 0)
    """
    acc = jnp.dot(p_ref[...], w_ref[...], preferred_element_type=jnp.float32)
    y = acc * sb_ref[0:1, :] + sb_ref[1:2, :]         # folded BatchNorm (eval)
    if approx_swish:
        # exp and reciprocal both land on the (otherwise idle) EUP slot.
        sig = pl.reciprocal(1.0 + jnp.exp(-y), approx=True)
    else:
        sig = jax.nn.sigmoid(y)
    o_ref[...] = (y * sig).astype(o_ref.dtype)


def conv_block_forward_nhwc(x_nhwc, weight_oihw, gamma, beta, running_mean,
                            running_var, *, stride=1, dilate=1, eps=1e-3,
                            compute_dtype=jnp.float32, out_dtype=None,
                            approx_swish=None, tile_m=None, tile_c=None,
                            slice_output=True):
    """ConvBlock forward, NHWC in / NHWC out (the Pallas-native layout).

    With slice_output=False the lane-padded (..., Cout_pad) output is returned
    so a following ConvBlock can consume it without an extra HBM round trip.
    """
    N, H, W, Cin = x_nhwc.shape
    Cout, Cin_w, K, K2 = weight_oihw.shape
    # TODO(synk): groups > 1 (grouped / depthwise conv) not supported.
    assert Cin_w == Cin and K == K2

    if out_dtype is None:
        out_dtype = x_nhwc.dtype
    if approx_swish is None:
        approx_swish = jnp.dtype(compute_dtype) == jnp.dtype(jnp.bfloat16)

    # PyTorch ConvBlock semantics: dilation is dropped whenever stride > 1.
    dil = 1 if stride > 1 else dilate
    pad = (K - 1) // 2 * dil
    Hout = (H + 2 * pad - dil * (K - 1) - 1) // stride + 1
    Wout = (W + 2 * pad - dil * (K - 1) - 1) // stride + 1

    # ---- wrapper-side patch extraction (lane-dense im2col) -----------------
    # Stride / dilation are folded into strided tap slices so the kernel sees a
    # plain stride-1 GEMM.  Patches are built directly in compute_dtype.
    x_pad = jnp.pad(x_nhwc, ((0, 0), (pad, pad), (pad, pad), (0, 0)))
    x_pad = x_pad.astype(compute_dtype)
    taps = []
    for kh in range(K):
        for kw in range(K):
            taps.append(
                x_pad[:,
                      kh * dil: kh * dil + (Hout - 1) * stride + 1: stride,
                      kw * dil: kw * dil + (Wout - 1) * stride + 1: stride,
                      :])
    patch = taps[0] if K == 1 else jnp.concatenate(taps, axis=-1)
    Kc = K * K * Cin
    M = N * Hout * Wout
    patch = patch.reshape(M, Kc)

    # ---- tiling -------------------------------------------------------------
    Cout_pad = _round_up(Cout, _LANE)         # lane-dense (unmasked) stores
    Kc_pad = _round_up(Kc, _LANE)             # lane-dense contraction
    if tile_c is None:
        tile_c = 256 if Cout_pad % 256 == 0 else _LANE
    if tile_m is None:
        tile_m = 512 if M >= 512 else _round_up(M, _SUBLANE)  # feed 256x256 MXU
    tile_m = _round_up(tile_m, _SUBLANE)
    M_pad = _round_up(M, tile_m)
    nC = Cout_pad // tile_c
    nM = M_pad // tile_m

    patch = jnp.pad(patch, ((0, M_pad - M), (0, Kc_pad - Kc)))

    # weights: (O, I, Kh, Kw) -> (Kh, Kw, I, O) -> (Kc_pad, Cout_pad)
    w_flat = jnp.transpose(weight_oihw, (2, 3, 1, 0)).reshape(Kc, Cout)
    w_flat = jnp.pad(w_flat, ((0, Kc_pad - Kc), (0, Cout_pad - Cout)))
    w_flat = w_flat.astype(compute_dtype)

    # fold BatchNorm (running stats / eval mode) into per-channel scale & bias.
    scale = (gamma / jnp.sqrt(running_var + eps)).astype(jnp.float32)
    bias = beta.astype(jnp.float32) - running_mean.astype(jnp.float32) * scale
    sb = jnp.zeros((_SUBLANE, Cout_pad), jnp.float32)
    sb = sb.at[0, :Cout].set(scale)
    sb = sb.at[1, :Cout].set(bias)

    kernel = functools.partial(_gemm_bn_swish_kernel, approx_swish=approx_swish)
    out = pl.pallas_call(
        kernel,
        out_shape=jax.ShapeDtypeStruct((M_pad, Cout_pad), out_dtype),
        grid_spec=pltpu.PrefetchScalarGridSpec(
            num_scalar_prefetch=0,
            # Cout-tile axis OUTER: weight / scale-bias blocks depend only on c
            # and stay VMEM-resident across the whole inner M sweep.
            grid=(nC, nM),
            in_specs=[
                pl.BlockSpec((tile_m, Kc_pad), lambda c, m: (m, 0)),
                pl.BlockSpec((Kc_pad, tile_c), lambda c, m: (0, c)),
                pl.BlockSpec((_SUBLANE, tile_c), lambda c, m: (0, c)),
            ],
            out_specs=pl.BlockSpec((tile_m, tile_c), lambda c, m: (m, c)),
        ),
        compiler_params=pltpu.CompilerParams(
            dimension_semantics=("parallel", "parallel"),
            vmem_limit_bytes=_vmem_limit_bytes(),
        ),
    )(patch, w_flat, sb)

    out = out[:M].reshape(N, Hout, Wout, Cout_pad)
    if slice_output:
        out = out[..., :Cout]
    return out


def conv_block_forward(x_nchw, weight_oihw, gamma, beta, running_mean,
                       running_var, *, stride=1, dilate=1, eps=1e-3,
                       compute_dtype=jnp.float32, out_dtype=None,
                       approx_swish=None):
    """PyTorch-parity entry point (NCHW in / NCHW out).

    For layer-to-layer use prefer conv_block_forward_nhwc (keeps NHWC
    end-to-end and can keep the lane-padded channel dim) to avoid the extra
    HBM round trips of these transposes.
    """
    x_nhwc = jnp.transpose(x_nchw, (0, 2, 3, 1))
    out_nhwc = conv_block_forward_nhwc(
        x_nhwc, weight_oihw, gamma, beta, running_mean, running_var,
        stride=stride, dilate=dilate, eps=eps, compute_dtype=compute_dtype,
        out_dtype=out_dtype, approx_swish=approx_swish)
    return jnp.transpose(out_nhwc, (0, 3, 1, 2))


def _reference(x_nchw, weight_oihw, gamma, beta, running_mean, running_var,
               *, stride=1, dilate=1, eps=1e-3):
    dil = 1 if stride > 1 else dilate
    K = weight_oihw.shape[2]
    pad = (K - 1) // 2 * dil
    y = jax.lax.conv_general_dilated(
        x_nchw, weight_oihw,
        window_strides=(stride, stride),
        padding=[(pad, pad), (pad, pad)],
        rhs_dilation=(dil, dil),
        dimension_numbers=("NCHW", "OIHW", "NCHW"),
        precision=jax.lax.Precision.HIGHEST,
    )
    scale = gamma / jnp.sqrt(running_var + eps)
    bias = beta - running_mean * scale
    y = y * scale[None, :, None, None] + bias[None, :, None, None]
    return y * jax.nn.sigmoid(y)


if __name__ == "__main__":
    key = jax.random.PRNGKey(0)
    ks = jax.random.split(key, 16)

    # Shapes consistent with the module: ConvBlock(in=4, out=8, kernel_size=3).
    N, Cin, H, W = 2, 4, 16, 16
    Cout, K = 8, 3

    x = jax.random.normal(ks[0], (N, Cin, H, W), dtype=jnp.float32)
    w3 = jax.random.normal(ks[1], (Cout, Cin, K, K), dtype=jnp.float32) * 0.1
    gamma = jax.random.uniform(ks[2], (Cout,), minval=0.5, maxval=1.5)
    beta = jax.random.normal(ks[3], (Cout,)) * 0.1
    mean = jax.random.normal(ks[4], (Cout,)) * 0.1
    var = jax.random.uniform(ks[5], (Cout,), minval=0.5, maxval=1.5)

    def check(out, ref, rtol, atol, tag):
        assert out.shape == ref.shape, (tag, out.shape, ref.shape)
        err = float(jnp.max(jnp.abs(out - ref)))
        assert bool(jnp.allclose(out, ref, rtol=rtol, atol=atol)), \
            f"{tag}: max abs err = {err}"

    # 1) f32 compute, stride=1, dilate=1
    out = jax.block_until_ready(conv_block_forward(
        x, w3, gamma, beta, mean, var, stride=1, dilate=1))
    ref = _reference(x, w3, gamma, beta, mean, var, stride=1, dilate=1)
    check(out, ref, 5e-4, 5e-4, "f32/stride1")

    # 2) bf16 MXU path (+ EUP approx-reciprocal Swish) vs a reference fed the
    #    same bf16-rounded activations / weights.
    out_bf16 = jax.block_until_ready(conv_block_forward(
        x, w3, gamma, beta, mean, var, stride=1, dilate=1,
        compute_dtype=jnp.bfloat16))
    x_q = x.astype(jnp.bfloat16).astype(jnp.float32)
    w_q = w3.astype(jnp.bfloat16).astype(jnp.float32)
    ref_q = _reference(x_q, w_q, gamma, beta, mean, var, stride=1, dilate=1)
    check(out_bf16, ref_q, 2e-2, 2e-2, "bf16/stride1")

    # 3) stride = 2 (dilation forced to 1, matching the PyTorch module)
    out_s2 = jax.block_until_ready(conv_block_forward(
        x, w3, gamma, beta, mean, var, stride=2, dilate=1))
    ref_s2 = _reference(x, w3, gamma, beta, mean, var, stride=2, dilate=1)
    check(out_s2, ref_s2, 5e-4, 5e-4, "f32/stride2")

    # 4) dilate = 2
    out_d2 = jax.block_until_ready(conv_block_forward(
        x, w3, gamma, beta, mean, var, stride=1, dilate=2))
    ref_d2 = _reference(x, w3, gamma, beta, mean, var, stride=1, dilate=2)
    check(out_d2, ref_d2, 5e-4, 5e-4, "f32/dilate2")

    # 5) 1x1 conv (pointwise, the most common ConvBlock shape in EfficientNet)
    w1 = jax.random.normal(ks[6], (Cout, Cin, 1, 1), dtype=jnp.float32) * 0.1
    out_1x1 = jax.block_until_ready(conv_block_forward(
        x, w1, gamma, beta, mean, var, stride=1, dilate=1))
    ref_1x1 = _reference(x, w1, gamma, beta, mean, var, stride=1, dilate=1)
    check(out_1x1, ref_1x1, 5e-4, 5e-4, "f32/1x1")

    # 6) wider / taller case exercising nC > 1 and nM > 1 grid tiles
    Cout2, H2, W2 = 320, 24, 24
    x2 = jax.random.normal(ks[7], (N, Cin, H2, W2), dtype=jnp.float32)
    w2 = jax.random.normal(ks[8], (Cout2, Cin, K, K), dtype=jnp.float32) * 0.1
    gamma2 = jax.random.uniform(ks[9], (Cout2,), minval=0.5, maxval=1.5)
    beta2 = jax.random.normal(ks[10], (Cout2,)) * 0.1
    mean2 = jax.random.normal(ks[11], (Cout2,)) * 0.1
    var2 = jax.random.uniform(ks[12], (Cout2,), minval=0.5, maxval=1.5)
    out_big = jax.block_until_ready(conv_block_forward(
        x2, w2, gamma2, beta2, mean2, var2, stride=1, dilate=1))
    ref_big = _reference(x2, w2, gamma2, beta2, mean2, var2, stride=1, dilate=1)
    check(out_big, ref_big, 5e-4, 5e-4, "f32/wide")

    print("KERNEL_OK")
</pallas_src>

<mosaic_0001>
module attributes {stable_mosaic.version = 11 : i64} {
  func.func @_gemm_bn_swish_kernel(%arg0: i32, %arg1: i32, %arg2: memref<512x128xf32, #tpu.memory_space<vmem>>, %arg3: memref<128x128xf32, #tpu.memory_space<vmem>>, %arg4: memref<8x128xf32, #tpu.memory_space<vmem>>, %arg5: memref<512x128xf32, #tpu.memory_space<vmem>>) attributes {dimension_semantics = [#tpu.dimension_semantics<parallel>, #tpu.dimension_semantics<parallel>], iteration_bounds = array<i64: 1, 1>, scalar_prefetch = 0 : i64, scratch_operands = 0 : i64, tpu.core_type = #tpu.core_type<tc>, window_params = [{transform_indices = @transform_0, window_bounds = array<i64: 512, 128>}, {transform_indices = @transform_1, window_bounds = array<i64: 128, 128>}, {transform_indices = @transform_2, window_bounds = array<i64: 8, 128>}, {transform_indices = @transform_3, window_bounds = array<i64: 512, 128>}]} {
    %c0 = arith.constant 0 : index
    %c0_0 = arith.constant 0 : index
    %0 = vector.load %arg2[%c0, %c0_0] : memref<512x128xf32, #tpu.memory_space<vmem>>, vector<512x128xf32>
    %c0_1 = arith.constant 0 : index
    %c0_2 = arith.constant 0 : index
    %1 = vector.load %arg3[%c0_1, %c0_2] : memref<128x128xf32, #tpu.memory_space<vmem>>, vector<128x128xf32>
    %cst = arith.constant dense<0.000000e+00> : vector<512x128xf32>
    %2 = tpu.matmul %0, %1, %cst {dimension_numbers = #tpu.dot_dimension_numbers<[1], [0], [0], [1], [0, 0, 1, 1], [], []>} : vector<512x128xf32>, vector<128x128xf32>, vector<512x128xf32> -> vector<512x128xf32>
    %c0_3 = arith.constant 0 : index
    %c0_4 = arith.constant 0 : index
    %3 = vector.load %arg4[%c0_3, %c0_4] : memref<8x128xf32, #tpu.memory_space<vmem>>, vector<1x128xf32>
    %4 = vector.broadcast %3 : vector<1x128xf32> to vector<512x128xf32>
    %5 = arith.mulf %2, %4 : vector<512x128xf32>
    %c1 = arith.constant 1 : index
    %c0_5 = arith.constant 0 : index
    %6 = vector.load %arg4[%c1, %c0_5] : memref<8x128xf32, #tpu.memory_space<vmem>>, vector<1x128xf32>
    %7 = vector.broadcast %6 : vector<1x128xf32> to vector<512x128xf32>
    %8 = arith.addf %5, %7 : vector<512x128xf32>
    %9 = arith.negf %8 : vector<512x128xf32>
    %10 = math.exp %9 : vector<512x128xf32>
    %cst_6 = arith.constant 1.000000e+00 : f32
    %11 = vector.broadcast %cst_6 : f32 to vector<512x128xf32>
    %12 = arith.addf %11, %10 : vector<512x128xf32>
    %13 = arith.divf %11, %12 : vector<512x128xf32>
    %14 = arith.mulf %8, %13 : vector<512x128xf32>
    %c0_7 = arith.constant 0 : index
    %c0_8 = arith.constant 0 : index
    %15 = vector.load %arg5[%c0_7, %c0_8] : memref<512x128xf32, #tpu.memory_space<vmem>>, vector<512x128xf32>
    tpu.vector_store %arg5[%c0_7, %c0_8], %14 {strides = array<i32>} : memref<512x128xf32, #tpu.memory_space<vmem>>, vector<512x128xf32>,
    return
  }
  func.func @transform_0(%arg0: i32, %arg1: i32) -> (i32, i32) {
    %c0_i32 = arith.constant 0 : i32
    %c0_i32_0 = arith.constant 0 : i32
    return %arg1, %c0_i32 : i32, i32
  }
  func.func @transform_1(%arg0: i32, %arg1: i32) -> (i32, i32) {
    %c0_i32 = arith.constant 0 : i32
    %c0_i32_0 = arith.constant 0 : i32
    return %c0_i32, %arg0 : i32, i32
  }
  func.func @transform_2(%arg0: i32, %arg1: i32) -> (i32, i32) {
    %c0_i32 = arith.constant 0 : i32
    %c0_i32_0 = arith.constant 0 : i32
    return %c0_i32, %arg0 : i32, i32
  }
  func.func @transform_3(%arg0: i32, %arg1: i32) -> (i32, i32) {
    %c0_i32 = arith.constant 0 : i32
    return %arg1, %arg0 : i32, i32
  }
}

</mosaic_0001>

<bundles_post_ra>
// kernel: tpu_custom_call.1
= control target key start
LH: loop header
LB: loop body
LE: loop exit
PB: predicated region body
PF: predicated region fallthrough
CT: control target
= control target key end

     0   :  { %8 = vsyncpa [#allocation3], 0  ;;  %s2288_s0 = inlined_call_operand.hbm [shape: f32[512,128], index: 0, kind: input, shape index: {}]   ;;  %s2289_s1 = inlined_call_operand.hbm [shape: f32[128,128], index: 1, kind: input, shape index: {}]   ;;  %s2290_s2 = inlined_call_operand.hbm [shape: f32[8,128], index: 2, kind: input, shape index: {}]   ;;  %s2291_s3 = inlined_call_operand.hbm [shape: f32[512,128], index: 3, kind: output, shape index: {}]  }
   0x1   :  { %9 = vsyncpa [#allocation6], 0 }
   0x2   :  { %10 = vsyncpa [#allocation4], 0  ;;  %s1843_s12 = smov [#allocation5]   ;;  %s1844_s14 = smov [#allocation2]  }
   0x3   :  { %s28_s13 = sshll.u32 %s1843_s12, 4  ;;  %s16_s15 = sshll.u32 %s1844_s14, 4  ;;  %s29_s13 = int_to_ptr.vmem [resolvable:$true] %s28_s13  ;;  %s17_s15 = int_to_ptr.vmem [resolvable:$true] %s16_s15 }
   0x4   :  { %s1765_s16 = scalar_lea.vmem %s29_s13, 2048  ;;  %p1770_p1 = scmp.lt.s32.totalorder %s29_s13, %s29_s13 }
   0x5   :  { %p1766_p0 = scmp.ne.s32.totalorder %s29_s13, %s1765_s16  ;;  %p1771_p2 = scmp.lt.s32.totalorder %s1765_s16, %s1765_s16 }
   0x7   :  { %p1772_p3 = por %p1771_p2, %p1770_p1 }
   0x9   :  { %p1773_p4 = pnand %p1772_p3, %p1766_p0 }
   0xb   :  { %1776 = shalt.err (!%p1773_p4)
}
   0xc   :  { %s1845_s17 = smov 128   ;;  %s1846_s18 = smov 8  }
   0xd   :  { %34 = dma.hbm_to_vmem [thread:$0]  %s2289_s1, 2048, %s29_s13, [#allocation6], %s1845_s17, %s1845_s17, %s1846_s18  }
   0xe   :  { %s1785_s21 = scalar_lea.vmem %s17_s15, 8192  ;;  %p1790_p6 = scmp.lt.s32.totalorder %s17_s15, %s17_s15 }
   0xf   :  { %p1786_p5 = scmp.ne.s32.totalorder %s17_s15, %s1785_s21  ;;  %p1791_p7 = scmp.lt.s32.totalorder %s1785_s21, %s1785_s21 }
  0x11   :  { %p1792_p8 = por %p1791_p7, %p1790_p6 }
  0x13   :  { %p1793_p9 = pnand %p1792_p8, %p1786_p5 }
  0x15   :  { %1796 = shalt.err (!%p1793_p9)
}
  0x16   :  { %22 = dma.hbm_to_vmem [thread:$0]  %s2288_s0, 8192, %s17_s15, [#allocation3], %s1845_s17, %s1845_s17, %s1846_s18  }
  0x17   :  { %s1847_s24 = smov [#allocation7]  }
  0x18   :  { %s41_s25 = sshll.u32 %s1847_s24, 4  ;;  %s42_s25 = int_to_ptr.vmem [resolvable:$true] %s41_s25 }
  0x19   :  { %s1805_s26 = scalar_lea.vmem %s42_s25, 128  ;;  %p1810_p11 = scmp.lt.s32.totalorder %s42_s25, %s42_s25 }
  0x1a   :  { %p1806_p10 = scmp.ne.s32.totalorder %s42_s25, %s1805_s26  ;;  %p1811_p12 = scmp.lt.s32.totalorder %s1805_s26, %s1805_s26 }
  0x1c   :  { %p1812_p13 = por %p1811_p12, %p1810_p11 }
  0x1e   :  { %p1813_p0 = pnand %p1812_p13, %p1806_p10 }
  0x20   :  { %1816 = shalt.err (!%p1813_p0)
}
  0x21   :  { %44 = dma.hbm_to_vmem [thread:$0]  %s2290_s2, 128, %s42_s25, [#allocation6]  }
  0x22   :  { %1837 = dma.done.wait [#allocation3], 8192  }
  0x23   :  { %1838 = vsyncadd [#allocation3], 4294959104 }
  0x24   :  { %1839 = dma.done.wait [#allocation6], 2176  }
  0x25   :  { %1840 = vsyncadd [#allocation6], 4294965120  ;;  %v133_v0 = vld [vmem:[#allocation5 + $0x78] sm:$0xff]  ;;  %v132_v1 = vld [vmem:[#allocation5 + $0x70] sm:$0xff]  ;;  %s1848_s0 = smov [#allocation8]  }
  0x26   :  { %1333 = vmatprep.subr.mxu0 %v133_v0  ;;  %1461 = vmatprep.subr.mxu1 %v133_v0  ;;  %v131_v2 = vld [vmem:[#allocation5 + $0x68] sm:$0xff]  ;;  %v130_v3 = vld [vmem:[#allocation5 + $0x60] sm:$0xff]  ;;  %v129_v4 = vld [vmem:[#allocation5 + $0x58] sm:$0xff]  ;;  %s1174_s2 = sshll.u32 %s1848_s0, 4  ;;  %s1175_s2 = int_to_ptr.vmem [resolvable:$true] %s1174_s2 }
  0x27   :  { %1334 = vmatpush3.msra.mxu0 %v133_v0  ;;  %1477 = vmatpush3.msra.mxu1 %v133_v0  ;;  %v128_v5 = vld [vmem:[#allocation5 + $0x50] sm:$0xff]  ;;  %v127_v6 = vld [vmem:[#allocation5 + $0x48] sm:$0xff]  ;;  %v126_v7 = vld [vmem:[#allocation5 + $0x40] sm:$0xff]  ;;  %s1817_s28 = scalar_lea.vmem %s1175_s2, 8192  ;;  %p1822_p2 = scmp.lt.s32.totalorder %s1175_s2, %s1175_s2 }
  0x28   :  { %1335 = vmatprep.subr.mxu0 %v132_v1  ;;  %1462 = vmatprep.subr.mxu1 %v132_v1  ;;  %v125_v8 = vld [vmem:[#allocation5 + $0x38] sm:$0xff]  ;;  %v124_v9 = vld [vmem:[#allocation5 + $0x30] sm:$0xff]  ;;  %v123_v10 = vld [vmem:[#allocation5 + $0x28] sm:$0xff]  ;;  %p1818_p1 = scmp.ne.s32.totalorder %s1175_s2, %s1817_s28  ;;  %p1823_p3 = scmp.lt.s32.totalorder %s1817_s28, %s1817_s28 }
  0x29   :  { %1336 = vmatpush3.msra.mxu0 %v132_v1  ;;  %1478 = vmatpush3.msra.mxu1 %v132_v1  ;;  %v122_v11 = vld [vmem:[#allocation5 + $0x20] sm:$0xff]  ;;  %v121_v12 = vld [vmem:[#allocation5 + $0x18] sm:$0xff]  ;;  %v120_v13 = vld [vmem:[#allocation5 + $0x10] sm:$0xff] }
  0x2a   :  { %1337 = vmatprep.subr.mxu0 %v131_v2  ;;  %1463 = vmatprep.subr.mxu1 %v131_v2  ;;  %v119_v14 = vld [vmem:[#allocation5 + $0x8] sm:$0xff]  ;;  %v118_v15 = vld [vmem:[#allocation5] sm:$0xff]  ;;  %v56_v20 = vld [vmem:[#allocation2 + $0x10] sm:$0xff]  ;;  %p1824_p4 = por %p1823_p3, %p1822_p2 }
  0x2b   :  { %1338 = vmatpush3.msra.mxu0 %v131_v2  ;;  %1479 = vmatpush3.msra.mxu1 %v131_v2  ;;  %v54_v16 = vld [vmem:[#allocation2] sm:$0xff]  ;;  %v55_v18 = vld [vmem:[#allocation2 + $0x8] sm:$0xff]  ;;  %v88_v21 = vld [vmem:[#allocation2 + $0x110] sm:$0xff] }
  0x2c   :  { %1339 = vmatprep.subr.mxu0 %v130_v3  ;;  %1464 = vmatprep.subr.mxu1 %v130_v3  ;;  %v86_v17 = vld [vmem:[#allocation2 + $0x100] sm:$0xff]  ;;  %v87_v19 = vld [vmem:[#allocation2 + $0x108] sm:$0xff]  ;;  %v57_v22 = vld [vmem:[#allocation2 + $0x18] sm:$0xff]  ;;  %p1825_p5 = pnand %p1824_p4, %p1818_p1 }
  0x2d   :  { %1340 = vmatpush3.msra.mxu0 %v130_v3  ;;  %1480 = vmatpush3.msra.mxu1 %v130_v3  ;;  %v89_v23 = vld [vmem:[#allocation2 + $0x118] sm:$0xff]  ;;  %v58_v24 = vld [vmem:[#allocation2 + $0x20] sm:$0xff]  ;;  %v59_v26 = vld [vmem:[#allocation2 + $0x28] sm:$0xff] }
  0x2e   :  { %1341 = vmatprep.subr.mxu0 %v129_v4  ;;  %1465 = vmatprep.subr.mxu1 %v129_v4  ;;  %v90_v25 = vld [vmem:[#allocation2 + $0x120] sm:$0xff]  ;;  %v91_v27 = vld [vmem:[#allocation2 + $0x128] sm:$0xff]  ;;  %v60_v28 = vld [vmem:[#allocation2 + $0x30] sm:$0xff] }
  0x2f   :  { %1342 = vmatpush3.msra.mxu0 %v129_v4  ;;  %1481 = vmatpush3.msra.mxu1 %v129_v4  ;;  %v92_v29 = vld [vmem:[#allocation2 + $0x130] sm:$0xff]  ;;  %v61_v30 = vld [vmem:[#allocation2 + $0x38] sm:$0xff]  ;;  %v62_v32 = vld [vmem:[#allocation2 + $0x40] sm:$0xff] }
  0x30   :  { %1343 = vmatprep.subr.mxu0 %v128_v5  ;;  %1466 = vmatprep.subr.mxu1 %v128_v5  ;;  %v93_v31 = vld [vmem:[#allocation2 + $0x138] sm:$0xff]  ;;  %v94_v33 = vld [vmem:[#allocation2 + $0x140] sm:$0xff]  ;;  %v63_v34 = vld [vmem:[#allocation2 + $0x48] sm:$0xff] }
  0x31   :  { %1344 = vmatpush3.msra.mxu0 %v128_v5  ;;  %1482 = vmatpush3.msra.mxu1 %v128_v5  ;;  %v95_v35 = vld [vmem:[#allocation2 + $0x148] sm:$0xff]  ;;  %v64_v36 = vld [vmem:[#allocation2 + $0x50] sm:$0xff]  ;;  %v65_v38 = vld [vmem:[#allocation2 + $0x58] sm:$0xff] }
  0x32   :  { %1345 = vmatprep.subr.mxu0 %v127_v6  ;;  %1467 = vmatprep.subr.mxu1 %v127_v6  ;;  %v96_v37 = vld [vmem:[#allocation2 + $0x150] sm:$0xff]  ;;  %v97_v39 = vld [vmem:[#allocation2 + $0x158] sm:$0xff]  ;;  %v66_v40 = vld [vmem:[#allocation2 + $0x60] sm:$0xff] }
  0x33   :  { %1346 = vmatpush3.msra.mxu0 %v127_v6  ;;  %1483 = vmatpush3.msra.mxu1 %v127_v6  ;;  %v98_v41 = vld [vmem:[#allocation2 + $0x160] sm:$0xff]  ;;  %v67_v42 = vld [vmem:[#allocation2 + $0x68] sm:$0xff]  ;;  %v68_v44 = vld [vmem:[#allocation2 + $0x70] sm:$0xff] }
  0x34   :  { %1347 = vmatprep.subr.mxu0 %v126_v7  ;;  %1468 = vmatprep.subr.mxu1 %v126_v7  ;;  %v99_v43 = vld [vmem:[#allocation2 + $0x168] sm:$0xff]  ;;  %v100_v45 = vld [vmem:[#allocation2 + $0x170] sm:$0xff]  ;;  %v69_v46 = vld [vmem:[#allocation2 + $0x78] sm:$0xff] }
  0x35   :  { %1348 = vmatpush3.msra.mxu0 %v126_v7  ;;  %1484 = vmatpush3.msra.mxu1 %v126_v7  ;;  %v101_v47 = vld [vmem:[#allocation2 + $0x178] sm:$0xff]  ;;  %v70_v48 = vld [vmem:[#allocation2 + $0x80] sm:$0xff]  ;;  %v71_v50 = vld [vmem:[#allocation2 + $0x88] sm:$0xff] }
  0x36   :  { %1349 = vmatprep.subr.mxu0 %v125_v8  ;;  %1469 = vmatprep.subr.mxu1 %v125_v8  ;;  %v102_v49 = vld [vmem:[#allocation2 + $0x180] sm:$0xff]  ;;  %v103_v51 = vld [vmem:[#allocation2 + $0x188] sm:$0xff]  ;;  %v72_v52 = vld [vmem:[#allocation2 + $0x90] sm:$0xff] }
  0x37   :  { %1350 = vmatpush3.msra.mxu0 %v125_v8  ;;  %1485 = vmatpush3.msra.mxu1 %v125_v8  ;;  %v104_v53 = vld [vmem:[#allocation2 + $0x190] sm:$0xff]  ;;  %v73_v54 = vld [vmem:[#allocation2 + $0x98] sm:$0xff]  ;;  %v74_v56 = vld [vmem:[#allocation2 + $0xa0] sm:$0xff] }
  0x38   :  { %1351 = vmatprep.subr.mxu0 %v124_v9  ;;  %1470 = vmatprep.subr.mxu1 %v124_v9  ;;  %v105_v55 = vld [vmem:[#allocation2 + $0x198] sm:$0xff]  ;;  %v106_v57 = vld [vmem:[#allocation2 + $0x1a0] sm:$0xff]  ;;  %v75_v58 = vld [vmem:[#allocation2 + $0xa8] sm:$0xff] }
  0x39   :  { %1352 = vmatpush3.msra.mxu0 %v124_v9  ;;  %1486 = vmatpush3.msra.mxu1 %v124_v9  ;;  %v107_v59 = vld [vmem:[#allocation2 + $0x1a8] sm:$0xff]  ;;  %v76_v60 = vld [vmem:[#allocation2 + $0xb0] sm:$0xff]  ;;  %v77_v62 = vld [vmem:[#allocation2 + $0xb8] sm:$0xff] }
  0x3a   :  { %1353 = vmatprep.subr.mxu0 %v123_v10  ;;  %1471 = vmatprep.subr.mxu1 %v123_v10  ;;  %v108_v61 = vld [vmem:[#allocation2 + $0x1b0] sm:$0xff]  ;;  %v109_v63 = vld [vmem:[#allocation2 + $0x1b8] sm:$0xff]  ;;  %v78_v0 = vld [vmem:[#allocation2 + $0xc0] sm:$0xff] }
  0x3b   :  { %1354 = vmatpush3.msra.mxu0 %v123_v10  ;;  %1487 = vmatpush3.msra.mxu1 %v123_v10  ;;  %v110_v1 = vld [vmem:[#allocation2 + $0x1c0] sm:$0xff]  ;;  %v79_v2 = vld [vmem:[#allocation2 + $0xc8] sm:$0xff]  ;;  %v80_v4 = vld [vmem:[#allocation2 + $0xd0] sm:$0xff] }
  0x3c   :  { %1355 = vmatprep.subr.mxu0 %v122_v11  ;;  %1472 = vmatprep.subr.mxu1 %v122_v11  ;;  %v111_v3 = vld [vmem:[#allocation2 + $0x1c8] sm:$0xff]  ;;  %v112_v5 = vld [vmem:[#allocation2 + $0x1d0] sm:$0xff]  ;;  %v81_v6 = vld [vmem:[#allocation2 + $0xd8] sm:$0xff] }
  0x3d   :  { %1356 = vmatpush3.msra.mxu0 %v122_v11  ;;  %1488 = vmatpush3.msra.mxu1 %v122_v11  ;;  %v113_v7 = vld [vmem:[#allocation2 + $0x1d8] sm:$0xff]  ;;  %v82_v8 = vld [vmem:[#allocation2 + $0xe0] sm:$0xff]  ;;  %v83_v10 = vld [vmem:[#allocation2 + $0xe8] sm:$0xff] }
  0x3e   :  { %1357 = vmatprep.subr.mxu0 %v121_v12  ;;  %1473 = vmatprep.subr.mxu1 %v121_v12  ;;  %v114_v9 = vld [vmem:[#allocation2 + $0x1e0] sm:$0xff]  ;;  %v115_v11 = vld [vmem:[#allocation2 + $0x1e8] sm:$0xff] }
  0x3f   :  { %1358 = vmatpush3.msra.mxu0 %v121_v12  ;;  %1489 = vmatpush3.msra.mxu1 %v121_v12  ;;  %v84_v12 = vld [vmem:[#allocation2 + $0xf0] sm:$0xff] }
  0x40   :  { %1359 = vmatprep.subr.mxu0 %v120_v13  ;;  %1474 = vmatprep.subr.mxu1 %v120_v13 }
  0x41   :  { %1360 = vmatpush3.msra.mxu0 %v120_v13  ;;  %1490 = vmatpush3.msra.mxu1 %v120_v13  ;;  %v116_v13 = vld [vmem:[#allocation2 + $0x1f0] sm:$0xff] }
  0x42   :  { %1361 = vmatprep.subr.mxu0 %v119_v14  ;;  %1475 = vmatprep.subr.mxu1 %v119_v14 }
  0x43   :  { %1362 = vmatpush3.msra.mxu0 %v119_v14  ;;  %1491 = vmatpush3.msra.mxu1 %v119_v14  ;;  %v85_v14 = vld [vmem:[#allocation2 + $0xf8] sm:$0xff] }
  0x44   :  { %1363 = vmatprep.subr.mxu0 %v118_v15  ;;  %1476 = vmatprep.subr.mxu1 %v118_v15 }
  0x45   :  { %1364 = vmatpush3.msra.mxu0 %v118_v15  ;;  %1492 = vmatpush3.msra.mxu1 %v118_v15  ;;  %v117_v15 = vld [vmem:[#allocation2 + $0x1f8] sm:$0xff] }
  0x46   :  { %1365 = vmatprep.mubr.f32.mxu0 %v54_v16  ;;  %1413 = vmatprep.mubr.f32.mxu1 %v86_v17  ;;  %v1884_v16 = vld [vmem:[#allocation7] ss:$0 sm:$0xff] }
  0x47   :  { %1366 = vmatmul.mubr.f32.vlgmr.msra.gmra.mxu0 %v55_v18  ;;  %1414 = vmatmul.mubr.f32.vlgmr.msra.gmra.mxu1 %v87_v19  ;;  %v1886_v18 = vld [vmem:[#allocation7 + $0x1] ss:$0 sm:$0xff] }
  0x48   :  { %1368 = vmatprep.mubr.f32.mxu0 %v56_v20  ;;  %1416 = vmatprep.mubr.f32.mxu1 %v88_v21 }
  0x4b   :  { %1369 = vmatmul.mubr.f32.gmra.mxu0 %v57_v22  ;;  %1417 = vmatmul.mubr.f32.gmra.mxu1 %v89_v23 }
  0x4c   :  { %1371 = vmatprep.mubr.f32.mxu0 %v58_v24  ;;  %1419 = vmatprep.mubr.f32.mxu1 %v90_v25 }
  0x4f   :  { %1372 = vmatmul.mubr.f32.gmra.mxu0 %v59_v26  ;;  %1420 = vmatmul.mubr.f32.gmra.mxu1 %v91_v27 }
  0x50   :  { %1374 = vmatprep.mubr.f32.mxu0 %v60_v28  ;;  %1422 = vmatprep.mubr.f32.mxu1 %v92_v29 }
  0x53   :  { %1375 = vmatmul.mubr.f32.gmra.mxu0 %v61_v30  ;;  %1423 = vmatmul.mubr.f32.gmra.mxu1 %v93_v31 }
  0x54   :  { %1377 = vmatprep.mubr.f32.mxu0 %v62_v32  ;;  %1425 = vmatprep.mubr.f32.mxu1 %v94_v33 }
  0x57   :  { %1378 = vmatmul.mubr.f32.gmra.mxu0 %v63_v34  ;;  %1426 = vmatmul.mubr.f32.gmra.mxu1 %v95_v35 }
  0x58   :  { %1380 = vmatprep.mubr.f32.mxu0 %v64_v36  ;;  %1428 = vmatprep.mubr.f32.mxu1 %v96_v37 }
  0x5b   :  { %1381 = vmatmul.mubr.f32.gmra.mxu0 %v65_v38  ;;  %1429 = vmatmul.mubr.f32.gmra.mxu1 %v97_v39 }
  0x5c   :  { %1383 = vmatprep.mubr.f32.mxu0 %v66_v40  ;;  %1431 = vmatprep.mubr.f32.mxu1 %v98_v41 }
  0x5f   :  { %1384 = vmatmul.mubr.f32.gmra.mxu0 %v67_v42  ;;  %1432 = vmatmul.mubr.f32.gmra.mxu1 %v99_v43 }
  0x60   :  { %1386 = vmatprep.mubr.f32.mxu0 %v68_v44  ;;  %1434 = vmatprep.mubr.f32.mxu1 %v100_v45 }
  0x63   :  { %1387 = vmatmul.mubr.f32.gmra.mxu0 %v69_v46  ;;  %1435 = vmatmul.mubr.f32.gmra.mxu1 %v101_v47 }
  0x64   :  { %1389 = vmatprep.mubr.f32.mxu0 %v70_v48  ;;  %1437 = vmatprep.mubr.f32.mxu1 %v102_v49 }
  0x67   :  { %1390 = vmatmul.mubr.f32.gmra.mxu0 %v71_v50  ;;  %1438 = vmatmul.mubr.f32.gmra.mxu1 %v103_v51 }
  0x68   :  { %1392 = vmatprep.mubr.f32.mxu0 %v72_v52  ;;  %1440 = vmatprep.mubr.f32.mxu1 %v104_v53 }
  0x6b   :  { %1393 = vmatmul.mubr.f32.gmra.mxu0 %v73_v54  ;;  %1441 = vmatmul.mubr.f32.gmra.mxu1 %v105_v55 }
  0x6c   :  { %1395 = vmatprep.mubr.f32.mxu0 %v74_v56  ;;  %1443 = vmatprep.mubr.f32.mxu1 %v106_v57 }
  0x6f   :  { %1396 = vmatmul.mubr.f32.gmra.mxu0 %v75_v58  ;;  %1444 = vmatmul.mubr.f32.gmra.mxu1 %v107_v59 }
  0x70   :  { %1398 = vmatprep.mubr.f32.mxu0 %v76_v60  ;;  %1446 = vmatprep.mubr.f32.mxu1 %v108_v61 }
  0x73   :  { %1399 = vmatmul.mubr.f32.gmra.mxu0 %v77_v62  ;;  %1447 = vmatmul.mubr.f32.gmra.mxu1 %v109_v63 }
  0x74   :  { %1401 = vmatprep.mubr.f32.mxu0 %v78_v0  ;;  %1449 = vmatprep.mubr.f32.mxu1 %v110_v1 }
  0x77   :  { %1402 = vmatmul.mubr.f32.gmra.mxu0 %v79_v2  ;;  %1450 = vmatmul.mubr.f32.gmra.mxu1 %v111_v3 }
  0x78   :  { %1404 = vmatprep.mubr.f32.mxu0 %v80_v4  ;;  %1452 = vmatprep.mubr.f32.mxu1 %v112_v5 }
  0x7b   :  { %1405 = vmatmul.mubr.f32.gmra.mxu0 %v81_v6  ;;  %1453 = vmatmul.mubr.f32.gmra.mxu1 %v113_v7 }
  0x7c   :  { %1407 = vmatprep.mubr.f32.mxu0 %v82_v8  ;;  %1455 = vmatprep.mubr.f32.mxu1 %v114_v9 }
  0x7f   :  { %1408 = vmatmul.mubr.f32.gmra.mxu0 %v83_v10  ;;  %1456 = vmatmul.mubr.f32.gmra.mxu1 %v115_v11 }
  0x80   :  { %1410 = vmatprep.mubr.f32.mxu0 %v84_v12  ;;  %1458 = vmatprep.mubr.f32.mxu1 %v116_v13 }
  0x83   :  { %1411 = vmatmul.mubr.f32.gmra.mxu0 %v85_v14  ;;  %1459 = vmatmul.mubr.f32.gmra.mxu1 %v117_v15 }
 0x107   :  { %v1367_v17 = vpop.f32.mrf.mxu0  ;;  %v1415_v19 = vpop.f32.mrf.mxu1 }
 0x108   :  { %v525_v20 = vmul.f32 %v1367_v17, %v1884_v16  ;;  %v557_v21 = vmul.f32 %v1415_v19, %v1884_v16 }
 0x109   :  { %v200_v22 = vpop.f32.mrf.mxu0  ;;  %v360_v23 = vpop.f32.mrf.mxu1 }
 0x10a   :  { %v1891_v24 = vadd.f32 %v1886_v18, %v525_v20  ;;  %v1894_v25 = vadd.f32 %v1886_v18, %v557_v21  ;;  %v524_v26 = vmul.f32 %v1884_v16, %v200_v22  ;;  %v556_v27 = vmul.f32 %v1884_v16, %v360_v23 }
 0x10b   :  { %v1370_v28 = vpop.f32.mrf.mxu0  ;;  %v1418_v29 = vpop.f32.mrf.mxu1 }
 0x10c   :  { %v1190_v30 = vmul.f32 -1.442695, %v1891_v24  ;;  %v1222_v31 = vmul.f32 -1.442695, %v1894_v25  ;;  %v1901_v32 = vadd.f32 %v1886_v18, %v524_v26  ;;  %v1904_v33 = vadd.f32 %v1886_v18, %v556_v27 }
 0x10d   :  { %v527_v34 = vmul.f32 %v1370_v28, %v1884_v16  ;;  %v559_v35 = vmul.f32 %v1418_v29, %v1884_v16  ;;  %v210_v36 = vpop.f32.mrf.mxu0  ;;  %v370_v37 = vpop.f32.mrf.mxu1 }
 0x10e   :  { %1499 = vpow2.f32 %v1190_v30  ;;  %v1189_v38 = vmul.f32 -1.442695, %v1901_v32  ;;  %v1221_v39 = vmul.f32 -1.442695, %v1904_v33  ;;  %v526_v40 = vmul.f32 %v1884_v16, %v210_v36 }
 0x10f   :  { %1501 = vpow2.f32 %v1222_v31  ;;  %v1912_v41 = vadd.f32 %v1886_v18, %v527_v34  ;;  %v1915_v42 = vadd.f32 %v1886_v18, %v559_v35  ;;  %v558_v43 = vmul.f32 %v1884_v16, %v370_v37  ;;  %v1373_v44 = vpop.f32.mrf.mxu0  ;;  %v1421_v45 = vpop.f32.mrf.mxu1 }
 0x110   :  { %1503 = vpow2.f32 %v1189_v38  ;;  %v1919_v46 = vadd.f32 %v1886_v18, %v526_v40  ;;  %v529_v47 = vmul.f32 %v1373_v44, %v1884_v16  ;;  %v561_v48 = vmul.f32 %v1421_v45, %v1884_v16 }
 0x111   :  { %1505 = vpow2.f32 %v1221_v39  ;;  %v1192_v49 = vmul.f32 -1.442695, %v1912_v41  ;;  %v1224_v50 = vmul.f32 -1.442695, %v1915_v42  ;;  %v1926_v51 = vadd.f32 %v1886_v18, %v558_v43  ;;  %v220_v52 = vpop.f32.mrf.mxu0  ;;  %v380_v53 = vpop.f32.mrf.mxu1 }
 0x112   :  { %v1191_v54 = vmul.f32 -1.442695, %v1919_v46  ;;  %v1930_v55 = vadd.f32 %v1886_v18, %v529_v47  ;;  %v1933_v56 = vadd.f32 %v1886_v18, %v561_v48  ;;  %v528_v57 = vmul.f32 %v1884_v16, %v220_v52 }
 0x113   :  { %1507 = vpow2.f32 %v1192_v49  ;;  %v1223_v58 = vmul.f32 -1.442695, %v1926_v51  ;;  %v560_v59 = vmul.f32 %v1884_v16, %v380_v53  ;;  %v1376_v60 = vpop.f32.mrf.mxu0  ;;  %v1424_v61 = vpop.f32.mrf.mxu1 }
 0x114   :  { %1509 = vpow2.f32 %v1224_v50  ;;  %v1194_v62 = vmul.f32 -1.442695, %v1930_v55  ;;  %v1226_v63 = vmul.f32 -1.442695, %v1933_v56  ;;  %v1941_v0 = vadd.f32 %v1886_v18, %v528_v57 }
 0x115   :  { %1511 = vpow2.f32 %v1191_v54  ;;  %v1944_v1 = vadd.f32 %v1886_v18, %v560_v59  ;;  %v531_v2 = vmul.f32 %v1376_v60, %v1884_v16  ;;  %v563_v3 = vmul.f32 %v1424_v61, %v1884_v16  ;;  %v230_v4 = vpop.f32.mrf.mxu0  ;;  %v390_v5 = vpop.f32.mrf.mxu1 }
 0x116   :  { %1513 = vpow2.f32 %v1223_v58  ;;  %v1193_v6 = vmul.f32 -1.442695, %v1941_v0  ;;  %v530_v7 = vmul.f32 %v1884_v16, %v230_v4  ;;  %v562_v8 = vmul.f32 %v1884_v16, %v390_v5 }
 0x117   :  { %1515 = vpow2.f32 %v1194_v62  ;;  %v1225_v9 = vmul.f32 -1.442695, %v1944_v1  ;;  %v1953_v10 = vadd.f32 %v1886_v18, %v531_v2  ;;  %v1956_v11 = vadd.f32 %v1886_v18, %v563_v3  ;;  %v1379_v12 = vpop.f32.mrf.mxu0  ;;  %v1427_v13 = vpop.f32.mrf.mxu1 }
 0x118   :  { %1517 = vpow2.f32 %v1226_v63  ;;  %v1959_v14 = vadd.f32 %v1886_v18, %v530_v7  ;;  %v1965_v22 = vadd.f32 %v1886_v18, %v562_v8  ;;  %v533_v39 = vmul.f32 %v1379_v12, %v1884_v16 }
 0x119   :  { %1519 = vpow2.f32 %v1193_v6  ;;  %v1196_v15 = vmul.f32 -1.442695, %v1953_v10  ;;  %v1228_v17 = vmul.f32 -1.442695, %v1956_v11  ;;  %v240_v19 = vpop.f32.mrf.mxu0  ;;  %v400_v20 = vpop.f32.mrf.mxu1  ;;  %v565_v43 = vmul.f32 %v1427_v13, %v1884_v16 }
 0x11a   :  { %1521 = vpow2.f32 %v1225_v9  ;;  %v1195_v21 = vmul.f32 -1.442695, %v1959_v14  ;;  %v1227_v36 = vmul.f32 -1.442695, %v1965_v22  ;;  %v532_v47 = vmul.f32 %v1884_v16, %v240_v19 }
 0x11b   :  { %v1500_v23 = vpop.eup %1499  ;;  %1523 = vpow2.f32 %v1196_v15  ;;  %v1382_v26 = vpop.f32.mrf.mxu0  ;;  %v564_v52 = vmul.f32 %v1884_v16, %v400_v20  ;;  %v1973_v58 = vadd.f32 %v1886_v18, %v533_v39  ;;  %v1977_v62 = vadd.f32 %v1886_v18, %v565_v43 }
 0x11c   :  { %v1502_v27 = vpop.eup %1501  ;;  %v850_v28 = vadd.f32 1.0, %v1500_v23  ;;  %1525 = vpow2.f32 %v1228_v17  ;;  %v1430_v31 = vpop.f32.mrf.mxu1  ;;  %v535_v59 = vmul.f32 %v1382_v26, %v1884_v16  ;;  %v1981_v4 = vadd.f32 %v1886_v18, %v532_v47 }
 0x11d   :  { %v1504_v29 = vpop.eup %1503  ;;  %v882_v30 = vadd.f32 1.0, %v1502_v27  ;;  %1527 = vpow2.f32 %v1195_v21  ;;  %v250_v37 = vpop.f32.mrf.mxu0  ;;  %v567_v63 = vmul.f32 %v1430_v31, %v1884_v16  ;;  %v1984_v8 = vadd.f32 %v1886_v18, %v564_v52 }
 0x11e   :  { %v1506_v34 = vpop.eup %1505  ;;  %1529 = vrcp.f32 %v850_v28  ;;  %v849_v35 = vadd.f32 1.0, %v1504_v29  ;;  %v410_v48 = vpop.f32.mrf.mxu1  ;;  %v534_v9 = vmul.f32 %v1884_v16, %v250_v37  ;;  %v1198_v17 = vmul.f32 -1.442695, %v1973_v58 }
 0x11f   :  { %1531 = vrcp.f32 %v882_v30  ;;  %v881_v38 = vadd.f32 1.0, %v1506_v34  ;;  %v1385_v53 = vpop.f32.mrf.mxu0  ;;  %v1989_v19 = vadd.f32 %v1886_v18, %v535_v59  ;;  %v1230_v23 = vmul.f32 -1.442695, %v1977_v62 }
 0x120   :  { %v1508_v40 = vpop.eup %1507  ;;  %1533 = vrcp.f32 %v849_v35  ;;  %v1433_v5 = vpop.f32.mrf.mxu1  ;;  %v1993_v26 = vadd.f32 %v1886_v18, %v567_v63  ;;  %v1197_v29 = vmul.f32 -1.442695, %v1981_v4  ;;  %v566_v30 = vmul.f32 %v1884_v16, %v410_v48 }
 0x121   :  { %v1510_v44 = vpop.eup %1509  ;;  %1535 = vrcp.f32 %v881_v38  ;;  %v852_v45 = vadd.f32 1.0, %v1508_v40  ;;  %v260_v12 = vpop.f32.mrf.mxu0  ;;  %v1999_v37 = vadd.f32 %v1886_v18, %v534_v9  ;;  %v1200_v43 = vmul.f32 -1.442695, %v1989_v19 }
 0x122   :  { %v1512_v49 = vpop.eup %1511  ;;  %v884_v50 = vadd.f32 1.0, %v1510_v44  ;;  %1537 = vpow2.f32 %v1227_v36  ;;  %v420_v31 = vpop.f32.mrf.mxu1  ;;  %v1229_v36 = vmul.f32 -1.442695, %v1984_v8  ;;  %v537_v44 = vmul.f32 %v1385_v53, %v1884_v16 }
 0x123   :  { %v1514_v54 = vpop.eup %1513  ;;  %1539 = vrcp.f32 %v852_v45  ;;  %v851_v57 = vadd.f32 1.0, %v1512_v49  ;;  %v1388_v38 = vpop.f32.mrf.mxu0  ;;  %v1232_v48 = vmul.f32 -1.442695, %v1993_v26  ;;  %v569_v49 = vmul.f32 %v1433_v5, %v1884_v16 }
 0x124   :  { %v1516_v60 = vpop.eup %1515  ;;  %1541 = vrcp.f32 %v884_v50  ;;  %v883_v61 = vadd.f32 1.0, %v1514_v54  ;;  %v2008_v54 = vadd.f32 %v1886_v18, %v566_v30  ;;  %v1436_v59 = vpop.f32.mrf.mxu1  ;;  %v539_v5 = vmul.f32 %v1388_v38, %v1884_v16 }
 0x125   :  { %v1518_v2 = vpop.eup %1517  ;;  %1543 = vrcp.f32 %v851_v57  ;;  %v854_v3 = vadd.f32 1.0, %v1516_v60  ;;  %v536_v57 = vmul.f32 %v1884_v16, %v260_v12  ;;  %v270_v63 = vpop.f32.mrf.mxu0  ;;  %v571_v9 = vmul.f32 %v1436_v59, %v1884_v16 }
 0x126   :  { %v1520_v6 = vpop.eup %1519  ;;  %1545 = vrcp.f32 %v883_v61  ;;  %v886_v7 = vadd.f32 1.0, %v1518_v2  ;;  %v568_v61 = vmul.f32 %v1884_v16, %v420_v31  ;;  %v2038_v31 = vadd.f32 %v1886_v18, %v539_v5 }
 0x127   :  { %v1522_v13 = vpop.eup %1521  ;;  %1547 = vrcp.f32 %v854_v3  ;;  %v853_v15 = vadd.f32 1.0, %v1520_v6  ;;  %v2016_v3 = vadd.f32 %v1886_v18, %v537_v44 }
 0x128   :  { %v1524_v20 = vpop.eup %1523  ;;  %1549 = vrcp.f32 %v886_v7  ;;  %v885_v21 = vadd.f32 1.0, %v1522_v13 }
 0x129   :  { %v1526_v27 = vpop.eup %1525  ;;  %1551 = vrcp.f32 %v853_v15  ;;  %v856_v28 = vadd.f32 1.0, %v1524_v20  ;;  %v538_v15 = vmul.f32 %v1884_v16, %v270_v63  ;;  %v1202_v30 = vmul.f32 -1.442695, %v2016_v3 }
 0x12a   :  { %v1528_v34 = vpop.eup %1527  ;;  %1553 = vrcp.f32 %v885_v21  ;;  %v888_v35 = vadd.f32 1.0, %v1526_v27  ;;  %v2031_v27 = vadd.f32 %v1886_v18, %v568_v61 }
 0x12b   :  { %v1530_v39 = vpop.eup %1529  ;;  %1555 = vrcp.f32 %v856_v28  ;;  %v855_v40 = vadd.f32 1.0, %v1528_v34  ;;  %v2033_v28 = vpop.f32.mrf.mxu0 }
 0x12c   :  { %v1532_v45 = vpop.eup %1531  ;;  %v1042_v47 = vmul.f32 %v1530_v39, %v1891_v24  ;;  %1557 = vrcp.f32 %v888_v35  ;;  %v1199_v24 = vmul.f32 -1.442695, %v1999_v37 }
 0x12d   :  { %v1534_v50 = vpop.eup %1533  ;;  %v1074_v52 = vmul.f32 %v1532_v45, %v1894_v25  ;;  %1559 = vrcp.f32 %v855_v40  ;;  %v2048_v40 = vadd.f32 %v1886_v18, %v538_v15  ;;  %v1233_v45 = vmul.f32 -1.442695, %v2031_v27 }
 0x12e   :  { %v1536_v60 = vpop.eup %1535  ;;  %1106 = vst [vmem:[#allocation8 + $0x8] sm:$0xff] %v1042_v47  ;;  %v1041_v53 = vmul.f32 %v1534_v50, %v1901_v32  ;;  %1561 = vpow2.f32 %v1198_v17  ;;  %v2020_v32 = vadd.f32 %v1886_v18, %v569_v49  ;;  %v430_v17 = vpop.f32.mrf.mxu1  ;;  %v1204_v50 = vmul.f32 -1.442695, %v2038_v31 }
 0x12f   :  { %v1538_v2 = vpop.eup %1537  ;;  %1138 = vst [vmem:[#allocation8 + $0x108] sm:$0xff] %v1074_v52  ;;  %v1073_v25 = vmul.f32 %v1536_v60, %v1904_v33  ;;  %1563 = vpow2.f32 %v1230_v23  ;;  %v2025_v33 = vadd.f32 %v1886_v18, %v536_v57  ;;  %v1231_v23 = vmul.f32 -1.442695, %v2008_v54 }
 0x130   :  { %v1540_v6 = vpop.eup %1539  ;;  %1105 = vst [vmem:[#allocation8] sm:$0xff] %v1041_v53  ;;  %v887_v7 = vadd.f32 1.0, %v1538_v2  ;;  %1565 = vpow2.f32 %v1197_v29  ;;  %v1234_v35 = vmul.f32 -1.442695, %v2020_v32  ;;  %v570_v47 = vmul.f32 %v1884_v16, %v430_v17 }
 0x131   :  { %v1542_v12 = vpop.eup %1541  ;;  %1137 = vst [vmem:[#allocation8 + $0x100] sm:$0xff] %v1073_v25  ;;  %v1044_v13 = vmul.f32 %v1540_v6, %v1912_v41  ;;  %1567 = vpow2.f32 %v1229_v36  ;;  %v2043_v36 = vadd.f32 %v1886_v18, %v571_v9  ;;  %v1201_v39 = vmul.f32 -1.442695, %v2025_v33 }
 0x132   :  { %v1544_v20 = vpop.eup %1543  ;;  %v1076_v21 = vmul.f32 %v1542_v12, %v1915_v42  ;;  %1569 = vrcp.f32 %v887_v7  ;;  %v1203_v53 = vmul.f32 -1.442695, %v2048_v40  ;;  %v2061_v63 = vadd.f32 %v1886_v18, %v570_v47 }
 0x133   :  { %v1546_v29 = vpop.eup %1545  ;;  %1108 = vst [vmem:[#allocation8 + $0x18] sm:$0xff] %v1044_v13  ;;  %v1043_v41 = vmul.f32 %v1544_v20, %v1919_v46  ;;  %1571 = vpow2.f32 %v1200_v43  ;;  %v1439_v43 = vpop.f32.mrf.mxu1 }
 0x134   :  { %v1548_v34 = vpop.eup %1547  ;;  %1140 = vst [vmem:[#allocation8 + $0x118] sm:$0xff] %v1076_v21  ;;  %v1075_v42 = vmul.f32 %v1546_v29, %v1926_v51  ;;  %1573 = vpow2.f32 %v1232_v48  ;;  %v280_v48 = vpop.f32.mrf.mxu0  ;;  %v1235_v13 = vmul.f32 -1.442695, %v2061_v63  ;;  %v573_v29 = vmul.f32 %v1439_v43, %v1884_v16 }
 0x135   :  { %v1550_v38 = vpop.eup %1549  ;;  %1107 = vst [vmem:[#allocation8 + $0x10] sm:$0xff] %v1043_v41  ;;  %v1046_v46 = vmul.f32 %v1548_v34, %v1930_v55  ;;  %1575 = vpow2.f32 %v1199_v24  ;;  %v440_v24 = vpop.f32.mrf.mxu1  ;;  %v540_v34 = vmul.f32 %v1884_v16, %v280_v48 }
 0x136   :  { %v1552_v44 = vpop.eup %1551  ;;  %1139 = vst [vmem:[#allocation8 + $0x110] sm:$0xff] %v1075_v42  ;;  %v1078_v51 = vmul.f32 %v1550_v38, %v1933_v56  ;;  %1577 = vpow2.f32 %v1231_v23  ;;  %v1236_v56 = vmul.f32 -1.442695, %v2043_v36  ;;  %v2076_v47 = vadd.f32 %v1886_v18, %v573_v29 }
 0x137   :  { %v1554_v49 = vpop.eup %1553  ;;  %1110 = vst [vmem:[#allocation8 + $0x28] sm:$0xff] %v1046_v46  ;;  %v1045_v55 = vmul.f32 %v1552_v44, %v1941_v0  ;;  %1579 = vpow2.f32 %v1202_v30  ;;  %v1442_v9 = vpop.f32.mrf.mxu1  ;;  %v572_v46 = vmul.f32 %v1884_v16, %v440_v24 }
 0x138   :  { %v1556_v52 = vpop.eup %1555  ;;  %1142 = vst [vmem:[#allocation8 + $0x128] sm:$0xff] %v1078_v51  ;;  %v1077_v57 = vmul.f32 %v1554_v49, %v1944_v1  ;;  %1581 = vpow2.f32 %v1234_v35  ;;  %v1394_v1 = vpop.f32.mrf.mxu0  ;;  %v575_v48 = vmul.f32 %v1442_v9, %v1884_v16 }
 0x139   :  { %v1558_v59 = vpop.eup %1557  ;;  %1109 = vst [vmem:[#allocation8 + $0x20] sm:$0xff] %v1045_v55  ;;  %v1048_v60 = vmul.f32 %v1556_v52, %v1953_v10  ;;  %1583 = vpow2.f32 %v1201_v39  ;;  %v450_v42 = vpop.f32.mrf.mxu1  ;;  %v543_v43 = vmul.f32 %v1394_v1, %v1884_v16 }
 0x13a   :  { %v1560_v61 = vpop.eup %1559  ;;  %1141 = vst [vmem:[#allocation8 + $0x120] sm:$0xff] %v1077_v57  ;;  %v1080_v0 = vmul.f32 %v1558_v59, %v1956_v11  ;;  %1585 = vpow2.f32 %v1233_v45  ;;  %v290_v15 = vpop.f32.mrf.mxu0  ;;  %v2083_v59 = vadd.f32 %v1886_v18, %v572_v46 }
 0x13b   :  { %v1562_v2 = vpop.eup %1561  ;;  %1112 = vst [vmem:[#allocation8 + $0x38] sm:$0xff] %v1048_v60  ;;  %v1047_v25 = vmul.f32 %v1560_v61, %v1959_v14  ;;  %1587 = vpow2.f32 %v1204_v50  ;;  %v541_v14 = vmul.f32 %v2033_v28, %v1884_v16  ;;  %v2080_v50 = vadd.f32 %v1886_v18, %v540_v34  ;;  %v1445_v52 = vpop.f32.mrf.mxu1 }
 0x13c   :  { %v1564_v5 = vpop.eup %1563  ;;  %1144 = vst [vmem:[#allocation8 + $0x138] sm:$0xff] %v1080_v0  ;;  %v858_v10 = vadd.f32 1.0, %v1562_v2  ;;  %1589 = vpow2.f32 %v1236_v56  ;;  %v1397_v39 = vpop.f32.mrf.mxu0  ;;  %v542_v60 = vmul.f32 %v1884_v16, %v290_v15  ;;  %v2088_v1 = vadd.f32 %v1886_v18, %v543_v43 }
 0x13d   :  { %v1566_v6 = vpop.eup %1565  ;;  %1111 = vst [vmem:[#allocation8 + $0x30] sm:$0xff] %v1047_v25  ;;  %v890_v7 = vadd.f32 1.0, %v1564_v5  ;;  %1591 = vpow2.f32 %v1203_v53  ;;  %v1238_v5 = vmul.f32 -1.442695, %v2076_v47  ;;  %v1205_v9 = vmul.f32 -1.442695, %v2080_v50 }
 0x13e   :  { %v1568_v11 = vpop.eup %1567  ;;  %1593 = vrcp.f32 %v858_v10  ;;  %v857_v12 = vadd.f32 1.0, %v1566_v6  ;;  %v300_v53 = vpop.f32.mrf.mxu0  ;;  %v2092_v10 = vadd.f32 %v1886_v18, %v575_v48  ;;  %v1208_v29 = vmul.f32 -1.442695, %v2088_v1 }
 0x13f   :  { %v1570_v17 = vpop.eup %1569  ;;  %1595 = vrcp.f32 %v890_v7  ;;  %v889_v20 = vadd.f32 1.0, %v1568_v11  ;;  %v574_v11 = vmul.f32 %v1884_v16, %v450_v42 }
 0x140   :  { %v1572_v21 = vpop.eup %1571  ;;  %v1079_v23 = vmul.f32 %v1570_v17, %v1965_v22  ;;  %1597 = vrcp.f32 %v857_v12  ;;  %v2072_v22 = vadd.f32 %v1886_v18, %v541_v14  ;;  %v460_v12 = vpop.f32.mrf.mxu1  ;;  %v1237_v17 = vmul.f32 -1.442695, %v2083_v59 }
 0x141   :  { %v1574_v41 = vpop.eup %1573  ;;  %1599 = vrcp.f32 %v889_v20  ;;  %v860_v30 = vadd.f32 1.0, %v1572_v21  ;;  %v2098_v20 = vadd.f32 %v1886_v18, %v542_v60  ;;  %v1400_v14 = vpop.f32.mrf.mxu0  ;;  %v1240_v42 = vmul.f32 -1.442695, %v2092_v10 }
 0x142   :  { %v1576_v35 = vpop.eup %1575  ;;  %1143 = vst [vmem:[#allocation8 + $0x130] sm:$0xff] %v1079_v23  ;;  %v892_v38 = vadd.f32 1.0, %v1574_v41  ;;  %1601 = vpow2.f32 %v1235_v13  ;;  %v1206_v0 = vmul.f32 -1.442695, %v2072_v22  ;;  %v545_v41 = vmul.f32 %v1397_v39, %v1884_v16  ;;  %v1448_v43 = vpop.f32.mrf.mxu1 }
 0x143   :  { %v1578_v28 = vpop.eup %1577  ;;  %1603 = vrcp.f32 %v860_v30  ;;  %v859_v44 = vadd.f32 1.0, %v1576_v35  ;;  %v577_v35 = vmul.f32 %v1445_v52, %v1884_v16  ;;  %v310_v48 = vpop.f32.mrf.mxu0  ;;  %v547_v52 = vmul.f32 %v1400_v14, %v1884_v16 }
 0x144   :  { %v1580_v51 = vpop.eup %1579  ;;  %1605 = vrcp.f32 %v892_v38  ;;  %v891_v45 = vadd.f32 1.0, %v1578_v28  ;;  %v2107_v28 = vadd.f32 %v1886_v18, %v574_v11  ;;  %v579_v60 = vmul.f32 %v1448_v43, %v1884_v16 }
 0x145   :  { %v1582_v49 = vpop.eup %1581  ;;  %1607 = vrcp.f32 %v859_v44  ;;  %v862_v55 = vadd.f32 1.0, %v1580_v51  ;;  %v544_v44 = vmul.f32 %v1884_v16, %v300_v53 }
 0x146   :  { %v1584_v57 = vpop.eup %1583  ;;  %1609 = vrcp.f32 %v891_v45  ;;  %v894_v56 = vadd.f32 1.0, %v1582_v49  ;;  %v576_v45 = vmul.f32 %v1884_v16, %v460_v12  ;;  %v2137_v12 = vadd.f32 %v1886_v18, %v547_v52 }
 0x147   :  { %v1586_v24 = vpop.eup %1585  ;;  %1611 = vrcp.f32 %v862_v55  ;;  %v861_v61 = vadd.f32 1.0, %v1584_v57  ;;  %v2115_v55 = vadd.f32 %v1886_v18, %v545_v41 }
 0x148   :  { %v1588_v2 = vpop.eup %1587  ;;  %1613 = vrcp.f32 %v894_v56  ;;  %v893_v25 = vadd.f32 1.0, %v1586_v24 }
 0x149   :  { %v1590_v6 = vpop.eup %1589  ;;  %1615 = vrcp.f32 %v861_v61  ;;  %v864_v7 = vadd.f32 1.0, %v1588_v2  ;;  %v546_v61 = vmul.f32 %v1884_v16, %v310_v48  ;;  %v1210_v11 = vmul.f32 -1.442695, %v2115_v55 }
 0x14a   :  { %v1592_v13 = vpop.eup %1591  ;;  %1617 = vrcp.f32 %v893_v25  ;;  %v896_v15 = vadd.f32 1.0, %v1590_v6  ;;  %v2130_v6 = vadd.f32 %v1886_v18, %v576_v45 }
 0x14b   :  { %v1594_v21 = vpop.eup %1593  ;;  %1619 = vrcp.f32 %v864_v7  ;;  %v863_v23 = vadd.f32 1.0, %v1592_v13  ;;  %v2132_v7 = vpop.f32.mrf.mxu0 }
 0x14c   :  { %v1596_v30 = vpop.eup %1595  ;;  %v1050_v34 = vmul.f32 %v1594_v21, %v1973_v58  ;;  %1621 = vrcp.f32 %v896_v15  ;;  %v1207_v58 = vmul.f32 -1.442695, %v2098_v20 }
 0x14d   :  { %v1598_v38 = vpop.eup %1597  ;;  %v1082_v46 = vmul.f32 %v1596_v30, %v1977_v62  ;;  %1623 = vrcp.f32 %v863_v23  ;;  %v2147_v23 = vadd.f32 %v1886_v18, %v546_v61  ;;  %v1241_v30 = vmul.f32 -1.442695, %v2130_v6 }
 0x14e   :  { %v1600_v51 = vpop.eup %1599  ;;  %1114 = vst [vmem:[#allocation8 + $0x48] sm:$0xff] %v1050_v34  ;;  %v1049_v39 = vmul.f32 %v1598_v38, %v1981_v4  ;;  %1625 = vpow2.f32 %v1206_v0  ;;  %v2119_v4 = vadd.f32 %v1886_v18, %v577_v35  ;;  %v470_v0 = vpop.f32.mrf.mxu1  ;;  %v1212_v38 = vmul.f32 -1.442695, %v2137_v12 }
 0x14f   :  { %v1602_v49 = vpop.eup %1601  ;;  %1146 = vst [vmem:[#allocation8 + $0x148] sm:$0xff] %v1082_v46  ;;  %v1081_v62 = vmul.f32 %v1600_v51, %v1984_v8  ;;  %1627 = vpow2.f32 %v1238_v5  ;;  %v2124_v8 = vadd.f32 %v1886_v18, %v544_v44  ;;  %v1239_v5 = vmul.f32 -1.442695, %v2107_v28 }
 0x150   :  { %v1604_v57 = vpop.eup %1603  ;;  %1113 = vst [vmem:[#allocation8 + $0x40] sm:$0xff] %v1049_v39  ;;  %v895_v56 = vadd.f32 1.0, %v1602_v49  ;;  %1629 = vpow2.f32 %v1205_v9  ;;  %v1242_v15 = vmul.f32 -1.442695, %v2119_v4  ;;  %v578_v34 = vmul.f32 %v1884_v16, %v470_v0 }
 0x151   :  { %v1606_v53 = vpop.eup %1605  ;;  %1145 = vst [vmem:[#allocation8 + $0x140] sm:$0xff] %v1081_v62  ;;  %v1052_v24 = vmul.f32 %v1604_v57, %v1989_v19  ;;  %1631 = vpow2.f32 %v1237_v17  ;;  %v2142_v17 = vadd.f32 %v1886_v18, %v579_v60  ;;  %v1209_v21 = vmul.f32 -1.442695, %v2124_v8 }
 0x152   :  { %v1608_v2 = vpop.eup %1607  ;;  %v1084_v25 = vmul.f32 %v1606_v53, %v1993_v26  ;;  %1633 = vrcp.f32 %v895_v56  ;;  %v1211_v39 = vmul.f32 -1.442695, %v2147_v23  ;;  %v2160_v48 = vadd.f32 %v1886_v18, %v578_v34 }
 0x153   :  { %v1610_v9 = vpop.eup %1609  ;;  %1116 = vst [vmem:[#allocation8 + $0x58] sm:$0xff] %v1052_v24  ;;  %v1051_v19 = vmul.f32 %v1608_v2, %v1999_v37  ;;  %1635 = vpow2.f32 %v1208_v29  ;;  %v1451_v29 = vpop.f32.mrf.mxu1 }
 0x154   :  { %v1612_v13 = vpop.eup %1611  ;;  %1148 = vst [vmem:[#allocation8 + $0x158] sm:$0xff] %v1084_v25  ;;  %v1083_v26 = vmul.f32 %v1610_v9, %v2008_v54  ;;  %1637 = vpow2.f32 %v1240_v42  ;;  %v320_v42 = vpop.f32.mrf.mxu0  ;;  %v1243_v24 = vmul.f32 -1.442695, %v2160_v48  ;;  %v581_v9 = vmul.f32 %v1451_v29, %v1884_v16 }
 0x155   :  { %v1614_v14 = vpop.eup %1613  ;;  %1115 = vst [vmem:[#allocation8 + $0x50] sm:$0xff] %v1051_v19  ;;  %v1054_v37 = vmul.f32 %v1612_v13, %v2016_v3  ;;  %1639 = vpow2.f32 %v1207_v58  ;;  %v480_v58 = vpop.f32.mrf.mxu1  ;;  %v548_v13 = vmul.f32 %v1884_v16, %v320_v42 }
 0x156   :  { %v1616_v41 = vpop.eup %1615  ;;  %1147 = vst [vmem:[#allocation8 + $0x150] sm:$0xff] %v1083_v26  ;;  %v1086_v54 = vmul.f32 %v1614_v14, %v2020_v32  ;;  %1641 = vpow2.f32 %v1239_v5  ;;  %v1244_v32 = vmul.f32 -1.442695, %v2142_v17  ;;  %v2175_v34 = vadd.f32 %v1886_v18, %v581_v9 }
 0x157   :  { %v1618_v35 = vpop.eup %1617  ;;  %1118 = vst [vmem:[#allocation8 + $0x68] sm:$0xff] %v1054_v37  ;;  %v1053_v3 = vmul.f32 %v1616_v41, %v2025_v33  ;;  %1643 = vpow2.f32 %v1210_v11  ;;  %v1454_v60 = vpop.f32.mrf.mxu1  ;;  %v580_v37 = vmul.f32 %v1884_v16, %v480_v58 }
 0x158   :  { %v1620_v46 = vpop.eup %1619  ;;  %1150 = vst [vmem:[#allocation8 + $0x168] sm:$0xff] %v1086_v54  ;;  %v1085_v44 = vmul.f32 %v1618_v35, %v2031_v27  ;;  %1645 = vpow2.f32 %v1242_v15  ;;  %v1406_v27 = vpop.f32.mrf.mxu0  ;;  %v583_v42 = vmul.f32 %v1454_v60, %v1884_v16 }
 0x159   :  { %v1622_v43 = vpop.eup %1621  ;;  %1117 = vst [vmem:[#allocation8 + $0x60] sm:$0xff] %v1053_v3  ;;  %v1056_v51 = vmul.f32 %v1620_v46, %v2038_v31  ;;  %1647 = vpow2.f32 %v1209_v21  ;;  %v490_v26 = vpop.f32.mrf.mxu1  ;;  %v551_v29 = vmul.f32 %v1406_v27, %v1884_v16 }
 0x15a   :  { %v1624_v45 = vpop.eup %1623  ;;  %1149 = vst [vmem:[#allocation8 + $0x160] sm:$0xff] %v1085_v44  ;;  %v1088_v33 = vmul.f32 %v1622_v43, %v2043_v36  ;;  %1649 = vpow2.f32 %v1241_v30  ;;  %v330_v61 = vpop.f32.mrf.mxu0  ;;  %v2182_v43 = vadd.f32 %v1886_v18, %v580_v37 }
 0x15b   :  { %v1626_v49 = vpop.eup %1625  ;;  %1120 = vst [vmem:[#allocation8 + $0x78] sm:$0xff] %v1056_v51  ;;  %v1055_v62 = vmul.f32 %v1624_v45, %v2048_v40  ;;  %1651 = vpow2.f32 %v1212_v38  ;;  %v549_v40 = vmul.f32 %v2132_v7, %v1884_v16  ;;  %v2179_v38 = vadd.f32 %v1886_v18, %v548_v13  ;;  %v1457_v46 = vpop.f32.mrf.mxu1 }
 0x15c   :  { %v1628_v52 = vpop.eup %1627  ;;  %1152 = vst [vmem:[#allocation8 + $0x178] sm:$0xff] %v1088_v33  ;;  %v866_v31 = vadd.f32 1.0, %v1626_v49  ;;  %1653 = vpow2.f32 %v1244_v32  ;;  %v1409_v21 = vpop.f32.mrf.mxu0  ;;  %v550_v51 = vmul.f32 %v1884_v16, %v330_v61  ;;  %v2187_v27 = vadd.f32 %v1886_v18, %v551_v29 }
 0x15d   :  { %v1630_v57 = vpop.eup %1629  ;;  %1119 = vst [vmem:[#allocation8 + $0x70] sm:$0xff] %v1055_v62  ;;  %v898_v56 = vadd.f32 1.0, %v1628_v52  ;;  %1655 = vpow2.f32 %v1211_v39  ;;  %v1246_v52 = vmul.f32 -1.442695, %v2175_v34  ;;  %v1213_v60 = vmul.f32 -1.442695, %v2179_v38 }
 0x15e   :  { %v1632_v36 = vpop.eup %1631  ;;  %1657 = vrcp.f32 %v866_v31  ;;  %v865_v53 = vadd.f32 1.0, %v1630_v57  ;;  %v340_v39 = vpop.f32.mrf.mxu0  ;;  %v2191_v31 = vadd.f32 %v1886_v18, %v583_v42  ;;  %v1216_v9 = vmul.f32 -1.442695, %v2187_v27 }
 0x15f   :  { %v1634_v0 = vpop.eup %1633  ;;  %1659 = vrcp.f32 %v898_v56  ;;  %v897_v2 = vadd.f32 1.0, %v1632_v36  ;;  %v582_v36 = vmul.f32 %v1884_v16, %v490_v26 }
 0x160   :  { %v1636_v25 = vpop.eup %1635  ;;  %v1087_v5 = vmul.f32 %v1634_v0, %v2061_v63  ;;  %1661 = vrcp.f32 %v865_v53  ;;  %v2171_v63 = vadd.f32 %v1886_v18, %v549_v40  ;;  %v500_v53 = vpop.f32.mrf.mxu1  ;;  %v1245_v0 = vmul.f32 -1.442695, %v2182_v43 }
 0x161   :  { %v1638_v19 = vpop.eup %1637  ;;  %1663 = vrcp.f32 %v897_v2  ;;  %v868_v11 = vadd.f32 1.0, %v1636_v25  ;;  %v2197_v2 = vadd.f32 %v1886_v18, %v550_v51  ;;  %v1412_v40 = vpop.f32.mrf.mxu0  ;;  %v1248_v26 = vmul.f32 -1.442695, %v2191_v31 }
 0x162   :  { %v1640_v15 = vpop.eup %1639  ;;  %1151 = vst [vmem:[#allocation8 + $0x170] sm:$0xff] %v1087_v5  ;;  %v900_v14 = vadd.f32 1.0, %v1638_v19  ;;  %1665 = vpow2.f32 %v1243_v24  ;;  %v1214_v33 = vmul.f32 -1.442695, %v2171_v63  ;;  %v553_v19 = vmul.f32 %v1409_v21, %v1884_v16  ;;  %v1460_v21 = vpop.f32.mrf.mxu1 }
 0x163   :  { %v1642_v7 = vpop.eup %1641  ;;  %1667 = vrcp.f32 %v868_v11  ;;  %v867_v41 = vadd.f32 1.0, %v1640_v15  ;;  %v2203_v15 = vld [vmem:[#allocation7] ss:$0 sm:$0xff]  ;;  %v350_v42 = vpop.f32.mrf.mxu0 }
 0x164   :  { %v1644_v54 = vpop.eup %1643  ;;  %1669 = vrcp.f32 %v900_v14  ;;  %v899_v30 = vadd.f32 1.0, %v1642_v7  ;;  %v585_v14 = vmul.f32 %v2203_v15, %v1457_v46  ;;  %v2207_v7 = vld [vmem:[#allocation7 + $0x1] ss:$0 sm:$0xff]  ;;  %v552_v16 = vmul.f32 %v2203_v15, %v340_v39 }
 0x165   :  { %v1646_v35 = vpop.eup %1645  ;;  %1671 = vrcp.f32 %v867_v41  ;;  %v870_v3 = vadd.f32 1.0, %v1644_v54  ;;  %v2210_v41 = vadd.f32 %v2207_v7, %v582_v36  ;;  %v1215_v54 = vmul.f32 -1.442695, %v2197_v2  ;;  %v510_v36 = vpop.f32.mrf.mxu1 }
 0x166   :  { %v1648_v44 = vpop.eup %1647  ;;  %1673 = vrcp.f32 %v899_v30  ;;  %v902_v32 = vadd.f32 1.0, %v1646_v35  ;;  %v584_v30 = vmul.f32 %v2203_v15, %v500_v53  ;;  %v555_v46 = vmul.f32 %v2203_v15, %v1412_v40 }
 0x167   :  { %v1650_v58 = vpop.eup %1649  ;;  %1675 = vrcp.f32 %v870_v3  ;;  %v869_v45 = vadd.f32 1.0, %v1648_v44  ;;  %v2218_v3 = vadd.f32 %v2207_v7, %v553_v19  ;;  %v587_v51 = vmul.f32 %v2203_v15, %v1460_v21 }
 0x168   :  { %v1652_v49 = vpop.eup %1651  ;;  %1677 = vrcp.f32 %v902_v32  ;;  %v901_v62 = vadd.f32 1.0, %v1650_v58  ;;  %v586_v19 = vmul.f32 %v2203_v15, %v510_v36 }
 0x169   :  { %v1654_v57 = vpop.eup %1653  ;;  %1679 = vrcp.f32 %v869_v45  ;;  %v872_v56 = vadd.f32 1.0, %v1652_v49  ;;  %v554_v45 = vmul.f32 %v2203_v15, %v350_v42 }
 0x16a   :  { %v1656_v24 = vpop.eup %1655  ;;  %1681 = vrcp.f32 %v901_v62  ;;  %v904_v61 = vadd.f32 1.0, %v1654_v57  ;;  %v1247_v62 = vmul.f32 -1.442695, %v2210_v41  ;;  %v2261_v21 = vadd.f32 %v2207_v7, %v586_v19 }
 0x16b   :  { %v1658_v25 = vpop.eup %1657  ;;  %1683 = vrcp.f32 %v872_v56  ;;  %v871_v5 = vadd.f32 1.0, %v1656_v24 }
 0x16c   :  { %v1660_v11 = vpop.eup %1659  ;;  %v1058_v13 = vmul.f32 %v1658_v25, %v2072_v22  ;;  %1685 = vrcp.f32 %v904_v61  ;;  %v2243_v61 = vadd.f32 %v2207_v7, %v587_v51  ;;  %v2248_v25 = vadd.f32 %v2207_v7, %v554_v45 }
 0x16d   :  { %v1662_v18 = vpop.eup %1661  ;;  %v1090_v37 = vmul.f32 %v1660_v11, %v2076_v47  ;;  %1687 = vrcp.f32 %v871_v5 }
 0x16e   :  { %v1664_v22 = vpop.eup %1663  ;;  %1122 = vst [vmem:[#allocation8 + $0x88] sm:$0xff] %v1058_v13  ;;  %v1057_v29 = vmul.f32 %v1662_v18, %v2080_v50  ;;  %1689 = vpow2.f32 %v1214_v33  ;;  %v2222_v50 = vadd.f32 %v2207_v7, %v585_v14  ;;  %v1252_v18 = vmul.f32 -1.442695, %v2243_v61 }
 0x16f   :  { %v1666_v47 = vpop.eup %1665  ;;  %1154 = vst [vmem:[#allocation8 + $0x188] sm:$0xff] %v1090_v37  ;;  %v1089_v35 = vmul.f32 %v1664_v22, %v2083_v59  ;;  %1691 = vpow2.f32 %v1246_v52  ;;  %v2227_v59 = vadd.f32 %v2207_v7, %v552_v16  ;;  %v2233_v52 = vadd.f32 %v2207_v7, %v584_v30 }
 0x170   :  { %v1668_v44 = vpop.eup %1667  ;;  %1121 = vst [vmem:[#allocation8 + $0x80] sm:$0xff] %v1057_v29  ;;  %v903_v32 = vadd.f32 1.0, %v1666_v47  ;;  %1693 = vpow2.f32 %v1213_v60  ;;  %v2238_v60 = vadd.f32 %v2207_v7, %v555_v46  ;;  %v1250_v24 = vmul.f32 -1.442695, %v2222_v50 }
 0x171   :  { %v1670_v39 = vpop.eup %1669  ;;  %1153 = vst [vmem:[#allocation8 + $0x180] sm:$0xff] %v1089_v35  ;;  %v1060_v58 = vmul.f32 %v1668_v44, %v2088_v1  ;;  %1695 = vpow2.f32 %v1245_v0  ;;  %v1218_v1 = vmul.f32 -1.442695, %v2218_v3  ;;  %v1217_v40 = vmul.f32 -1.442695, %v2227_v59 }
 0x172   :  { %v1672_v33 = vpop.eup %1671  ;;  %v1092_v49 = vmul.f32 %v1670_v39, %v2092_v10  ;;  %1697 = vrcp.f32 %v903_v32  ;;  %v1219_v15 = vmul.f32 -1.442695, %v2248_v25  ;;  %v1251_v47 = vmul.f32 -1.442695, %v2261_v21 }
 0x173   :  { %v1674_v57 = vpop.eup %1673  ;;  %1124 = vst [vmem:[#allocation8 + $0x98] sm:$0xff] %v1060_v58  ;;  %v1059_v56 = vmul.f32 %v1672_v33, %v2098_v20  ;;  %1699 = vpow2.f32 %v1216_v9  ;;  %v1249_v9 = vmul.f32 -1.442695, %v2233_v52 }
 0x174   :  { %v1676_v53 = vpop.eup %1675  ;;  %1156 = vst [vmem:[#allocation8 + $0x198] sm:$0xff] %v1092_v49  ;;  %v1091_v10 = vmul.f32 %v1674_v57, %v2107_v28  ;;  %1701 = vpow2.f32 %v1248_v26 }
 0x175   :  { %v1678_v0 = vpop.eup %1677  ;;  %1123 = vst [vmem:[#allocation8 + $0x90] sm:$0xff] %v1059_v56  ;;  %v1062_v20 = vmul.f32 %v1676_v53, %v2115_v55  ;;  %1703 = vpow2.f32 %v1215_v54  ;;  %v1220_v55 = vmul.f32 -1.442695, %v2238_v60 }
 0x176   :  { %v1680_v5 = vpop.eup %1679  ;;  %1155 = vst [vmem:[#allocation8 + $0x190] sm:$0xff] %v1091_v10  ;;  %v1094_v28 = vmul.f32 %v1678_v0, %v2119_v4  ;;  %1705 = vpow2.f32 %v1247_v62 }
 0x177   :  { %v1682_v11 = vpop.eup %1681  ;;  %1126 = vst [vmem:[#allocation8 + $0xa8] sm:$0xff] %v1062_v20  ;;  %v1061_v13 = vmul.f32 %v1680_v5, %v2124_v8  ;;  %1707 = vpow2.f32 %v1218_v1 }
 0x178   :  { %v1684_v26 = vpop.eup %1683  ;;  %1158 = vst [vmem:[#allocation8 + $0x1a8] sm:$0xff] %v1094_v28  ;;  %v1093_v14 = vmul.f32 %v1682_v11, %v2130_v6  ;;  %1709 = vpow2.f32 %v1250_v24 }
 0x179   :  { %v1686_v4 = vpop.eup %1685  ;;  %1125 = vst [vmem:[#allocation8 + $0xa0] sm:$0xff] %v1061_v13  ;;  %v1064_v37 = vmul.f32 %v1684_v26, %v2137_v12  ;;  %1711 = vpow2.f32 %v1217_v40 }
 0x17a   :  { %v1688_v16 = vpop.eup %1687  ;;  %1157 = vst [vmem:[#allocation8 + $0x1a0] sm:$0xff] %v1093_v14  ;;  %v1096_v8 = vmul.f32 %v1686_v4, %v2142_v17  ;;  %1713 = vpow2.f32 %v1249_v9 }
 0x17b   :  { %v1690_v22 = vpop.eup %1689  ;;  %1128 = vst [vmem:[#allocation8 + $0xb8] sm:$0xff] %v1064_v37  ;;  %v1063_v6 = vmul.f32 %v1688_v16, %v2147_v23  ;;  %1715 = vpow2.f32 %v1220_v55 }
 0x17c   :  { %v1692_v29 = vpop.eup %1691  ;;  %1160 = vst [vmem:[#allocation8 + $0x1b8] sm:$0xff] %v1096_v8  ;;  %v874_v54 = vadd.f32 1.0, %v1690_v22  ;;  %1717 = vpow2.f32 %v1252_v18 }
 0x17d   :  { %v1694_v12 = vpop.eup %1693  ;;  %1127 = vst [vmem:[#allocation8 + $0xb0] sm:$0xff] %v1063_v6  ;;  %v906_v30 = vadd.f32 1.0, %v1692_v29  ;;  %1719 = vpow2.f32 %v1219_v15 }
 0x17e   :  { %v1696_v42 = vpop.eup %1695  ;;  %1721 = vrcp.f32 %v874_v54  ;;  %v873_v17 = vadd.f32 1.0, %v1694_v12 }
 0x17f   :  { %v1698_v7 = vpop.eup %1697  ;;  %1723 = vrcp.f32 %v906_v30  ;;  %v905_v35 = vadd.f32 1.0, %v1696_v42 }
 0x180   :  { %v1700_v46 = vpop.eup %1699  ;;  %v1095_v23 = vmul.f32 %v1698_v7, %v2160_v48  ;;  %1725 = vrcp.f32 %v873_v17 }
 0x181   :  { %v1702_v44 = vpop.eup %1701  ;;  %1727 = vrcp.f32 %v905_v35  ;;  %v876_v32 = vadd.f32 1.0, %v1700_v46 }
 0x182   :  { %v1704_v51 = vpop.eup %1703  ;;  %1159 = vst [vmem:[#allocation8 + $0x1b0] sm:$0xff] %v1095_v23  ;;  %v908_v39 = vadd.f32 1.0, %v1702_v44  ;;  %1729 = vpow2.f32 %v1251_v47 }
 0x183   :  { %v1706_v58 = vpop.eup %1705  ;;  %1731 = vrcp.f32 %v876_v32  ;;  %v875_v45 = vadd.f32 1.0, %v1704_v51 }
 0x184   :  { %v1708_v33 = vpop.eup %1707  ;;  %1733 = vrcp.f32 %v908_v39  ;;  %v907_v49 = vadd.f32 1.0, %v1706_v58 }
 0x185   :  { %v1710_v62 = vpop.eup %1709  ;;  %1735 = vrcp.f32 %v875_v45  ;;  %v878_v57 = vadd.f32 1.0, %v1708_v33 }
 0x186   :  { %v1712_v56 = vpop.eup %1711  ;;  %1737 = vrcp.f32 %v907_v49  ;;  %v910_v48 = vadd.f32 1.0, %v1710_v62 }
 0x187   :  { %v1714_v1 = vpop.eup %1713  ;;  %1739 = vrcp.f32 %v878_v57  ;;  %v877_v36 = vadd.f32 1.0, %v1712_v56 }
 0x188   :  { %v1716_v53 = vpop.eup %1715  ;;  %1741 = vrcp.f32 %v910_v48  ;;  %v909_v10 = vadd.f32 1.0, %v1714_v1 }
 0x189   :  { %v1718_v24 = vpop.eup %1717  ;;  %1743 = vrcp.f32 %v877_v36  ;;  %v880_v0 = vadd.f32 1.0, %v1716_v53 }
 0x18a   :  { %v1720_v20 = vpop.eup %1719  ;;  %1745 = vrcp.f32 %v909_v10  ;;  %v912_v40 = vadd.f32 1.0, %v1718_v24 }
 0x18b   :  { %v1722_v5 = vpop.eup %1721  ;;  %1747 = vrcp.f32 %v880_v0  ;;  %v879_v28 = vadd.f32 1.0, %v1720_v20 }
 0x18c   :  { %v1724_v9 = vpop.eup %1723  ;;  %v1066_v19 = vmul.f32 %v1722_v5, %v2171_v63  ;;  %1749 = vrcp.f32 %v912_v40 }
 0x18d   :  { %v1726_v11 = vpop.eup %1725  ;;  %v1098_v13 = vmul.f32 %v1724_v9, %v2175_v34  ;;  %1751 = vrcp.f32 %v879_v28 }
 0x18e   :  { %v1728_v55 = vpop.eup %1727  ;;  %1130 = vst [vmem:[#allocation8 + $0xc8] sm:$0xff] %v1066_v19  ;;  %v1065_v26 = vmul.f32 %v1726_v11, %v2179_v38 }
 0x18f   :  { %v1730_v14 = vpop.eup %1729  ;;  %1162 = vst [vmem:[#allocation8 + $0x1c8] sm:$0xff] %v1098_v13  ;;  %v1097_v18 = vmul.f32 %v1728_v55, %v2182_v43 }
 0x190   :  { %v1732_v4 = vpop.eup %1731  ;;  %1129 = vst [vmem:[#allocation8 + $0xc0] sm:$0xff] %v1065_v26  ;;  %v911_v37 = vadd.f32 1.0, %v1730_v14 }
 0x191   :  { %v1734_v15 = vpop.eup %1733  ;;  %1161 = vst [vmem:[#allocation8 + $0x1c0] sm:$0xff] %v1097_v18  ;;  %v1068_v63 = vmul.f32 %v1732_v4, %v2187_v27 }
 0x192   :  { %v1736_v16 = vpop.eup %1735  ;;  %v1100_v8 = vmul.f32 %v1734_v15, %v2191_v31  ;;  %1753 = vrcp.f32 %v911_v37 }
 0x193   :  { %v1738_v34 = vpop.eup %1737  ;;  %1132 = vst [vmem:[#allocation8 + $0xd8] sm:$0xff] %v1068_v63  ;;  %v1067_v22 = vmul.f32 %v1736_v16, %v2197_v2 }
 0x194   :  { %v1740_v38 = vpop.eup %1739  ;;  %1164 = vst [vmem:[#allocation8 + $0x1d8] sm:$0xff] %v1100_v8  ;;  %v1099_v6 = vmul.f32 %v1738_v34, %v2210_v41 }
 0x195   :  { %v1742_v43 = vpop.eup %1741  ;;  %1131 = vst [vmem:[#allocation8 + $0xd0] sm:$0xff] %v1067_v22  ;;  %v1070_v29 = vmul.f32 %v1740_v38, %v2218_v3 }
 0x196   :  { %v1744_v54 = vpop.eup %1743  ;;  %1163 = vst [vmem:[#allocation8 + $0x1d0] sm:$0xff] %v1099_v6  ;;  %v1102_v27 = vmul.f32 %v1742_v43, %v2222_v50 }
 0x197   :  { %v1746_v12 = vpop.eup %1745  ;;  %1134 = vst [vmem:[#allocation8 + $0xe8] sm:$0xff] %v1070_v29  ;;  %v1069_v31 = vmul.f32 %v1744_v54, %v2227_v59 }
 0x198   :  { %v1748_v30 = vpop.eup %1747  ;;  %1166 = vst [vmem:[#allocation8 + $0x1e8] sm:$0xff] %v1102_v27  ;;  %v1101_v2 = vmul.f32 %v1746_v12, %v2233_v52 }
 0x199   :  { %v1750_v42 = vpop.eup %1749  ;;  %1133 = vst [vmem:[#allocation8 + $0xe0] sm:$0xff] %v1069_v31  ;;  %v1072_v41 = vmul.f32 %v1748_v30, %v2238_v60 }
 0x19a   :  { %v1752_v17 = vpop.eup %1751  ;;  %1165 = vst [vmem:[#allocation8 + $0x1e0] sm:$0xff] %v1101_v2  ;;  %v1104_v3 = vmul.f32 %v1750_v42, %v2243_v61 }
 0x19b   :  { %1136 = vst [vmem:[#allocation8 + $0xf8] sm:$0xff] %v1072_v41  ;;  %v1071_v47 = vmul.f32 %v1752_v17, %v2248_v25 }
 0x19c   :  { %1168 = vst [vmem:[#allocation8 + $0x1f8] sm:$0xff] %v1104_v3 }
 0x19d   :  { %1135 = vst [vmem:[#allocation8 + $0xf0] sm:$0xff] %v1071_v47 }
 0x19f   :  { %v1754_v50 = vpop.eup %1753 }
 0x1a0   :  { %v1103_v59 = vmul.f32 %v1754_v50, %v2261_v21 }
 0x1a2   :  { %1167 = vst [vmem:[#allocation8 + $0x1f0] sm:$0xff] %v1103_v59 }
 0x1a3   :  { %1828 = shalt.err (!%p1825_p5)
}
 0x1a4   :  { %1180 = dma.vmem_to_hbm [thread:$0]  %s1175_s2, 8192, %s2291_s3, [#allocation4], %s1845_s17, %s1845_s17, %s1846_s18  }
 0x1a5   :  { %1841 = dma.done.wait [#allocation4], 8192  }
 0x1a6   :  { %1842 = vsyncadd [#allocation4], 4294959104 }
 0x1a7   :  { %1184 = vsyncpa [#allocation3], 1 }
 0x1a8   :  { %1185 = vsyncpa [#allocation6], 1 }
 0x1a9   :  { %1186 = vsyncpa [#allocation4], 1 }

</bundles_post_ra>
